<compile_context>
chip_gen: v6e
topology: v6e:2x2x1
jax: 0.10.0
libtpu: 0.0.40
codegen_flags: <defaults>
</compile_context>

<pallas_src>
import numpy as np
import jax
import jax.numpy as jnp
from jax.experimental import pallas as pl
from jax.experimental.pallas import tpu as pltpu


def v_bb_kernel(rho_ref, p_ref, x_ref, y_ref, b_ref, o_ref):
    # rho_ref: (1, 1) in SMEM          self.rho_V_BB_layer (learned scalar)
    # p_ref:   (2*N_RF, 2*N)           real block form of cpinv(V_RF) (resident)
    # x_ref:   (2*N, BC)               X column slab  [real rows ; imag rows]
    # y_ref:   (2*N, BC)               Y column slab
    # b_ref:   (2*N_RF, BC)            params4 column slab
    # o_ref:   (2*N_RF, BC)            V_BB column slab
    rho = rho_ref[0, 0]                                   # scalar from SMEM
    z = x_ref[...] + rho * y_ref[...]                     # VPU: X + rho * Y
    # One MXU matmul does the whole complex product for every k in the block:
    # [[Pr,-Pi],[Pi,Pr]] @ [Zr;Zi] = [real(P Z); imag(P Z)].
    o_ref[...] = (jnp.dot(p_ref[...], z, preferred_element_type=jnp.float32)
                  + b_ref[...])


def _pick_block_cols(C):
    # Single grid step (largest lane-dense block) whenever the working set is
    # comfortably inside scoped VMEM -- splitting tiny blocks only adds the
    # ~0.35 us per-step overhead (v5e/v6e have one TensorCore; on v7x the
    # per-core work here is far too small to amortize a split).
    if C <= 2048:
        return C
    for bc in (2048, 1024, 512, 256, 128):
        if C % bc == 0:
            return bc
    return C


def _block_pinv(v_rf):
    """Real-block-form pseudo-inverse of the complex matrix V_RF.

    B(A) = [[Ar, -Ai], [Ai, Ar]];  pinv(B(A)) == B(pinv(A)) (SVD-based, so it
    degrades gracefully for rank-deficient V_RF like torch.pinverse).  The
    block structure is symmetrized to suppress f32 SVD noise.
    """
    ar, ai = v_rf[0], v_rf[1]                               # (N, N_RF) each
    n, n_rf = ar.shape
    a_blk = jnp.block([[ar, -ai], [ai, ar]])                # (2N, 2N_RF)
    q = jnp.linalg.pinv(a_blk)                              # (2N_RF, 2N)
    pr = 0.5 * (q[:n_rf, :n] + q[n_rf:, n:])
    pi = 0.5 * (q[n_rf:, :n] - q[:n_rf, n:])
    return jnp.block([[pr, -pi], [pi, pr]])                 # (2N_RF, 2N)


def v_bb_layer(v_rf, x, y, rho, rho_param, params4):
    """Pallas equivalent of V_BB_layer.forward.

    v_rf:      [2, N, N_RF]     analog precoder (shared over k)
    x, y:      [K, 2, N, d]
    rho:       unused (kept to mirror the PyTorch signature)
    rho_param: scalar           self.rho_V_BB_layer
    params4:   [K, 2, N_RF, d]  per-k bias parameters, stacked
    returns:   [K, 2, N_RF, d]  float32
    """
    del rho  # unused by the PyTorch forward as well
    K, _, N, d = x.shape
    N_RF = v_rf.shape[-1]
    C = K * d
    f32 = jnp.float32

    # cpinv once, in the wrapper (tiny (2N, 2N_RF) SVD), passed in resident.
    p_blk = _block_pinv(v_rf.astype(f32))                   # (2*N_RF, 2*N)

    # Layout plumbing: complex channel folded into rows (sublanes), flattened
    # (k, d) on the 128-lane axis -> lane-dense loads / unmasked (8, BC) stores.
    def to_slab(t, rows):
        return jnp.transpose(t, (1, 2, 0, 3)).reshape(2 * rows, C).astype(f32)

    x_s = to_slab(x, N)                                     # (2N, C)
    y_s = to_slab(y, N)                                     # (2N, C)
    b_s = to_slab(params4, N_RF)                            # (2N_RF, C)
    rho_arr = jnp.full((1, 1), rho_param, f32)

    BC = _pick_block_cols(C)
    grid_steps = C // BC

    flops = int(2 * (2 * N_RF) * (2 * N) * C      # main matmul
                + 2 * (2 * N) * C                 # X + rho*Y
                + (2 * N_RF) * C)                 # bias add
    bytes_accessed = int(4 * (2 * (2 * N) * C            # X, Y
                              + 2 * (2 * N_RF) * C       # bias, out
                              + (2 * N_RF) * (2 * N)     # P
                              + 1))

    out_slab = pl.pallas_call(
        v_bb_kernel,
        out_shape=jax.ShapeDtypeStruct((2 * N_RF, C), f32),
        grid=(grid_steps,),
        in_specs=[
            pl.BlockSpec(memory_space=pltpu.MemorySpace.SMEM),        # rho scalar
            pl.BlockSpec((2 * N_RF, 2 * N), lambda c: (0, 0)),        # P (resident)
            pl.BlockSpec((2 * N, BC), lambda c: (0, c)),              # X columns
            pl.BlockSpec((2 * N, BC), lambda c: (0, c)),              # Y columns
            pl.BlockSpec((2 * N_RF, BC), lambda c: (0, c)),           # params4 cols
        ],
        out_specs=pl.BlockSpec((2 * N_RF, BC), lambda c: (0, c)),
        compiler_params=pltpu.CompilerParams(
            dimension_semantics=("parallel",)),
        cost_estimate=pl.CostEstimate(
            flops=flops, transcendentals=0, bytes_accessed=bytes_accessed),
    )(rho_arr, p_blk, x_s, y_s, b_s)

    # (2*N_RF, K*d) -> [K, 2, N_RF, d]  (caller-facing PyTorch layout)
    return jnp.transpose(out_slab.reshape(2, N_RF, K, d), (2, 0, 1, 3))


def _reference(v_rf, x, y, rho_param, params4):
    """Pure numpy complex reference of V_BB_layer.forward."""
    v_rf = np.asarray(v_rf, np.float64)
    x = np.asarray(x, np.float64)
    y = np.asarray(y, np.float64)
    b = np.asarray(params4, np.float64)
    A = v_rf[0] + 1j * v_rf[1]                               # (N, N_RF)
    P = np.linalg.pinv(A)                                    # cpinv(V_RF)
    Xc = x[:, 0] + 1j * x[:, 1]                              # (K, N, d)
    Yc = y[:, 0] + 1j * y[:, 1]
    Bc = b[:, 0] + 1j * b[:, 1]
    V = np.einsum('rn,knd->krd', P, Xc + rho_param * Yc) + Bc
    return np.stack([V.real, V.imag], axis=1).astype(np.float32)


if __name__ == "__main__":
    # Small shapes consistent with the module; K*d = 256 columns -> 1 grid step.
    K, N, N_RF, d = 64, 16, 4, 4

    key = jax.random.PRNGKey(0)
    k1, k2, k3, k4 = jax.random.split(key, 4)

    # Analog precoder with unit-modulus entries (hybrid beamforming convention).
    theta = jax.random.uniform(k1, (N, N_RF), jnp.float32, 0.0, 2.0 * np.pi)
    V_RF = jnp.stack([jnp.cos(theta), jnp.sin(theta)], axis=0)   # [2, N, N_RF]

    X = 0.1 * jax.random.normal(k2, (K, 2, N, d), jnp.float32)
    Y = 0.1 * jax.random.normal(k3, (K, 2, N, d), jnp.float32)
    params4 = 0.01 * jax.random.normal(k4, (K, 2, N_RF, d), jnp.float32)
    rho_param = 8.0      # initial value of self.rho_V_BB_layer
    rho_arg = 1.0        # forward(..., rho) argument -- unused by the module

    V_BB = jax.block_until_ready(
        v_bb_layer(V_RF, X, Y, rho_arg, rho_param, params4))

    V_ref = _reference(V_RF, X, Y, rho_param, params4)
    assert V_BB.shape == (K, 2, N_RF, d)
    assert np.allclose(np.asarray(V_BB), V_ref, rtol=1e-3, atol=1e-3), (
        "mismatch vs reference: max abs err = %g"
        % float(np.max(np.abs(np.asarray(V_BB) - V_ref))))

    print("KERNEL_OK")
</pallas_src>

<mosaic_0001>
module attributes {stable_mosaic.version = 11 : i64} {
  func.func @v_bb_kernel(%arg0: i32, %arg1: memref<1x1xf32, #tpu.memory_space<smem>>, %arg2: memref<8x32xf32, #tpu.memory_space<vmem>>, %arg3: memref<32x256xf32, #tpu.memory_space<vmem>>, %arg4: memref<32x256xf32, #tpu.memory_space<vmem>>, %arg5: memref<8x256xf32, #tpu.memory_space<vmem>>, %arg6: memref<8x256xf32, #tpu.memory_space<vmem>>) attributes {dimension_semantics = [#tpu.dimension_semantics<parallel>], iteration_bounds = array<i64: 1>, scalar_prefetch = 0 : i64, scratch_operands = 0 : i64, tpu.core_type = #tpu.core_type<tc>, window_params = [{transform_indices = @transform_0, window_bounds = array<i64: 1, 1>}, {pipeline_mode = #tpu.pipeline_mode<synchronous>, transform_indices = @transform_1, window_bounds = array<i64: 8, 32>}, {transform_indices = @transform_2, window_bounds = array<i64: 32, 256>}, {transform_indices = @transform_3, window_bounds = array<i64: 32, 256>}, {transform_indices = @transform_4, window_bounds = array<i64: 8, 256>}, {transform_indices = @transform_5, window_bounds = array<i64: 8, 256>}]} {
    %c0 = arith.constant 0 : index
    %c0_0 = arith.constant 0 : index
    %0 = memref.load %arg1[%c0, %c0_0] : memref<1x1xf32, #tpu.memory_space<smem>>
    %c0_1 = arith.constant 0 : index
    %c0_2 = arith.constant 0 : index
    %1 = vector.load %arg3[%c0_1, %c0_2] : memref<32x256xf32, #tpu.memory_space<vmem>>, vector<32x256xf32>
    %c0_3 = arith.constant 0 : index
    %c0_4 = arith.constant 0 : index
    %2 = vector.load %arg4[%c0_3, %c0_4] : memref<32x256xf32, #tpu.memory_space<vmem>>, vector<32x256xf32>
    %3 = vector.broadcast %0 : f32 to vector<32x256xf32>
    %4 = arith.mulf %3, %2 : vector<32x256xf32>
    %5 = arith.addf %1, %4 : vector<32x256xf32>
    %c0_5 = arith.constant 0 : index
    %c0_6 = arith.constant 0 : index
    %6 = vector.load %arg2[%c0_5, %c0_6] : memref<8x32xf32, #tpu.memory_space<vmem>>, vector<8x32xf32>
    %cst = arith.constant dense<0.000000e+00> : vector<8x256xf32>
    %7 = tpu.matmul %6, %5, %cst {dimension_numbers = #tpu.dot_dimension_numbers<[1], [0], [0], [1], [0, 0, 1, 1], [], []>} : vector<8x32xf32>, vector<32x256xf32>, vector<8x256xf32> -> vector<8x256xf32>
    %c0_7 = arith.constant 0 : index
    %c0_8 = arith.constant 0 : index
    %8 = vector.load %arg5[%c0_7, %c0_8] : memref<8x256xf32, #tpu.memory_space<vmem>>, vector<8x256xf32>
    %9 = arith.addf %7, %8 : vector<8x256xf32>
    %c0_9 = arith.constant 0 : index
    %c0_10 = arith.constant 0 : index
    %10 = vector.load %arg6[%c0_9, %c0_10] : memref<8x256xf32, #tpu.memory_space<vmem>>, vector<8x256xf32>
    tpu.vector_store %arg6[%c0_9, %c0_10], %9 {strides = array<i32>} : memref<8x256xf32, #tpu.memory_space<vmem>>, vector<8x256xf32>,
    return
  }
  func.func @transform_0(%arg0: i32) -> (i32, i32) {
    %c0_i32 = arith.constant 0 : i32
    %c0_i32_0 = arith.constant 0 : i32
    %c0_i32_1 = arith.constant 0 : i32
    return %c0_i32, %c0_i32_0 : i32, i32
  }
  func.func @transform_1(%arg0: i32) -> (i32, i32) {
    %c0_i32 = arith.constant 0 : i32
    %c0_i32_0 = arith.constant 0 : i32
    %c0_i32_1 = arith.constant 0 : i32
    return %c0_i32, %c0_i32_0 : i32, i32
  }
  func.func @transform_2(%arg0: i32) -> (i32, i32) {
    %c0_i32 = arith.constant 0 : i32
    %c0_i32_0 = arith.constant 0 : i32
    return %c0_i32, %arg0 : i32, i32
  }
  func.func @transform_3(%arg0: i32) -> (i32, i32) {
    %c0_i32 = arith.constant 0 : i32
    %c0_i32_0 = arith.constant 0 : i32
    return %c0_i32, %arg0 : i32, i32
  }
  func.func @transform_4(%arg0: i32) -> (i32, i32) {
    %c0_i32 = arith.constant 0 : i32
    %c0_i32_0 = arith.constant 0 : i32
    return %c0_i32, %arg0 : i32, i32
  }
  func.func @transform_5(%arg0: i32) -> (i32, i32) {
    %c0_i32 = arith.constant 0 : i32
    %c0_i32_0 = arith.constant 0 : i32
    return %c0_i32, %arg0 : i32, i32
  }
}

</mosaic_0001>

<bundles_post_ra>
// kernel: tpu_custom_call.1
= control target key start
LH: loop header
LB: loop body
LE: loop exit
PB: predicated region body
PF: predicated region fallthrough
CT: control target
= control target key end

     0   :  { %11 = vsyncpa [#allocation4], 0  ;;  %s377_s0 = inlined_call_operand.<no memory space> [shape: f32[1,1], index: 0, kind: input, shape index: {}]   ;;  %s378_s1 = inlined_call_operand.hbm [shape: f32[8,32], index: 1, kind: input, shape index: {}]   ;;  %s379_s2 = inlined_call_operand.hbm [shape: f32[32,256], index: 2, kind: input, shape index: {}]   ;;  %s380_s3 = inlined_call_operand.hbm [shape: f32[32,256], index: 3, kind: input, shape index: {}]   ;;  %s381_s4 = inlined_call_operand.hbm [shape: f32[8,256], index: 4, kind: input, shape index: {}]   ;;  %s382_s5 = inlined_call_operand.hbm [shape: f32[8,256], index: 5, kind: output, shape index: {}]  }
   0x1   :  { %12 = vsyncpa [#allocation7], 0 }
   0x2   :  { %13 = vsyncpa [#allocation10], 0 }
   0x3   :  { %14 = vsyncpa [#allocation5], 0  ;;  %s321_s18 = smov [#allocation6]  }
   0x4   :  { %s32_s19 = sshll.u32 %s321_s18, 4  ;;  %s33_s19 = int_to_ptr.vmem [resolvable:$true] %s32_s19 }
   0x5   :  { %s221_s20 = scalar_lea.vmem %s33_s19, 1024  ;;  %p226_p1 = scmp.lt.s32.totalorder %s33_s19, %s33_s19 }
   0x6   :  { %p222_p0 = scmp.ne.s32.totalorder %s33_s19, %s221_s20  ;;  %p227_p2 = scmp.lt.s32.totalorder %s221_s20, %s221_s20 }
   0x8   :  { %p228_p3 = por %p227_p2, %p226_p1 }
   0xa   :  { %p229_p4 = pnand %p228_p3, %p222_p0 }
   0xc   :  { %232 = shalt.err (!%p229_p4)
}
   0xd   :  { %s322_s21 = smov 256   ;;  %s323_s22 = smov 16  }
   0xe   :  { %38 = dma.hbm_to_vmem [thread:$0]  %s379_s2, 1024, %s33_s19, [#allocation7], %s322_s21, %s322_s21, %s323_s22  }
   0xf   :  { %s324_s25 = smov [#allocation3]   ;;  %s325_s27 = smov [#allocation8]  }
  0x10   :  { %s23_s26 = sshll.u32 %s324_s25, 4  ;;  %s44_s28 = sshll.u32 %s325_s27, 4  ;;  %s24_s26 = int_to_ptr.vmem [resolvable:$true] %s23_s26  ;;  %s45_s28 = int_to_ptr.vmem [resolvable:$true] %s44_s28 }
  0x11   :  { %s241_s29 = scalar_lea.vmem %s24_s26, 128  ;;  %p246_p6 = scmp.lt.s32.totalorder %s24_s26, %s24_s26 }
  0x12   :  { %p242_p5 = scmp.ne.s32.totalorder %s24_s26, %s241_s29  ;;  %p247_p7 = scmp.lt.s32.totalorder %s241_s29, %s241_s29 }
  0x14   :  { %p248_p8 = por %p247_p7, %p246_p6 }
  0x16   :  { %p249_p9 = pnand %p248_p8, %p242_p5 }
  0x18   :  { %252 = shalt.err (!%p249_p9)
}
  0x19   :  { %26 = dma.hbm_to_vmem [thread:$0]  %s378_s1, 128, %s24_s26, [#allocation4]  }
  0x1a   :  { %s261_s7 = scalar_lea.vmem %s45_s28, 1024  ;;  %p266_p11 = scmp.lt.s32.totalorder %s45_s28, %s45_s28 }
  0x1b   :  { %p262_p10 = scmp.ne.s32.totalorder %s45_s28, %s261_s7  ;;  %p267_p12 = scmp.lt.s32.totalorder %s261_s7, %s261_s7 }
  0x1d   :  { %p268_p13 = por %p267_p12, %p266_p11 }
  0x1f   :  { %p269_p0 = pnand %p268_p13, %p262_p10 }
  0x21   :  { %272 = shalt.err (!%p269_p0)
}
  0x22   :  { %50 = dma.hbm_to_vmem [thread:$0]  %s380_s3, 1024, %s45_s28, [#allocation7], %s322_s21, %s322_s21, %s323_s22  }
  0x23   :  { %s326_s9 = smov [#allocation9]  }
  0x24   :  { %s57_s10 = sshll.u32 %s326_s9, 4  ;;  %s58_s10 = int_to_ptr.vmem [resolvable:$true] %s57_s10 }
  0x25   :  { %s281_s11 = scalar_lea.vmem %s58_s10, 256  ;;  %p286_p2 = scmp.lt.s32.totalorder %s58_s10, %s58_s10 }
  0x26   :  { %p282_p1 = scmp.ne.s32.totalorder %s58_s10, %s281_s11  ;;  %p287_p3 = scmp.lt.s32.totalorder %s281_s11, %s281_s11 }
  0x28   :  { %p288_p4 = por %p287_p3, %p286_p2 }
  0x2a   :  { %p289_p5 = pnand %p288_p4, %p282_p1 }
  0x2c   :  { %292 = shalt.err (!%p289_p5)
}
  0x2d   :  { %60 = dma.hbm_to_vmem [thread:$0]  %s381_s4, 256, %s58_s10, [#allocation10]  }
  0x2e   :  { %313 = dma.done.wait [#allocation4], 128  }
  0x2f   :  { %314 = vsyncadd [#allocation4], 4294967168 }
  0x30   :  { %315 = dma.done.wait [#allocation7], 2048  }
  0x31   :  { %316 = vsyncadd [#allocation7], 4294965248 }
  0x32   :  { %317 = dma.done.wait [#allocation10], 256  }
  0x33   :  { %318 = vsyncadd [#allocation10], 4294967040  ;;  %v327_v0 = vmov 0.0   ;;  %v90_v1 = vstv %s377_s0  ;;  %v81_v2 = vld [vmem:[#allocation6 + $0x38] sm:$0xff]  ;;  %v80_v4 = vld [vmem:[#allocation6 + $0x30] sm:$0xff]  ;;  %vm110_vm0 = vcmask 261120  }
  0x34   :  { %178 = vmatprep.mubr.f32.mxu0 %v327_v0  ;;  %v89_v3 = vld [vmem:[#allocation8 + $0x38] sm:$0xff]  ;;  %v88_v6 = vld [vmem:[#allocation8 + $0x30] sm:$0xff]  ;;  %v79_v7 = vld [vmem:[#allocation6 + $0x28] sm:$0xff]  ;;  %s328_s0 = smov [#allocation11]  }
  0x35   :  { %v98_v5 = vmul.f32 %v90_v1, %v89_v3  ;;  %v87_v8 = vld [vmem:[#allocation8 + $0x28] sm:$0xff]  ;;  %v97_v9 = vmul.f32 %v90_v1, %v88_v6  ;;  %v78_v11 = vld [vmem:[#allocation6 + $0x20] sm:$0xff]  ;;  %v77_v13 = vld [vmem:[#allocation6 + $0x18] sm:$0xff]  ;;  %s193_s4 = sshll.u32 %s328_s0, 4  ;;  %s194_s4 = int_to_ptr.vmem [resolvable:$true] %s193_s4 }
  0x36   :  { %v96_v10 = vmul.f32 %v90_v1, %v87_v8  ;;  %v86_v12 = vld [vmem:[#allocation8 + $0x20] sm:$0xff]  ;;  %v85_v16 = vld [vmem:[#allocation8 + $0x18] sm:$0xff]  ;;  %v76_v17 = vld [vmem:[#allocation6 + $0x10] sm:$0xff]  ;;  %s293_s14 = scalar_lea.vmem %s194_s4, 256  ;;  %p298_p7 = scmp.lt.s32.totalorder %s194_s4, %s194_s4 }
  0x37   :  { %v106_v14 = vadd.f32 %v98_v5, %v81_v2  ;;  %v95_v15 = vmul.f32 %v90_v1, %v86_v12  ;;  %v84_v18 = vld [vmem:[#allocation8 + $0x10] sm:$0xff]  ;;  %v105_v19 = vadd.f32 %v97_v9, %v80_v4  ;;  %v94_v21 = vmul.f32 %v90_v1, %v85_v16  ;;  %v75_v23 = vld [vmem:[#allocation6 + $0x8] sm:$0xff]  ;;  %v74_v27 = vld [vmem:[#allocation6] sm:$0xff]  ;;  %p294_p6 = scmp.ne.s32.totalorder %s194_s4, %s293_s14  ;;  %p299_p8 = scmp.lt.s32.totalorder %s293_s14, %s293_s14 }
  0x38   :  { %v104_v20 = vadd.f32 %v96_v10, %v79_v7  ;;  %v93_v22 = vmul.f32 %v90_v1, %v84_v18  ;;  %v83_v24 = vld [vmem:[#allocation8 + $0x8] sm:$0xff]  ;;  %v82_v28 = vld [vmem:[#allocation8] sm:$0xff]  ;;  %v107_v34 = vld [vmem:[#allocation3] sm:$0xff] }
  0x39   :  { %138 = vmatprep.subr.mxu0 %v106_v14  ;;  %v103_v25 = vadd.f32 %v95_v15, %v78_v11  ;;  %v92_v26 = vmul.f32 %v90_v1, %v83_v24  ;;  %v102_v29 = vadd.f32 %v94_v21, %v77_v13  ;;  %v91_v31 = vmul.f32 %v90_v1, %v82_v28  ;;  %v108_v35 = vld [vmem:[#allocation9] sm:$0xff]  ;;  %v109_v37 = vld [vmem:[#allocation9 + $0x8] sm:$0xff]  ;;  %p300_p9 = por %p299_p8, %p298_p7 }
  0x3a   :  { %139 = vmatpush1.msra.mxu0 %v105_v19  ;;  %v101_v30 = vadd.f32 %v93_v22, %v76_v17 }
  0x3b   :  { %140 = vmatprep.subr.mxu0 %v104_v20  ;;  %v100_v32 = vadd.f32 %v92_v26, %v75_v23  ;;  %v99_v33 = vadd.f32 %v91_v31, %v74_v27  ;;  %p301_p10 = pnand %p300_p9, %p294_p6 }
  0x3c   :  { %141 = vmatpush1.msra.mxu0 %v103_v25 }
  0x3d   :  { %142 = vmatprep.subr.mxu0 %v102_v29 }
  0x3e   :  { %143 = vmatpush1.msra.mxu0 %v101_v30 }
  0x3f   :  { %144 = vmatprep.subr.mxu0 %v100_v32 }
  0x40   :  { %145 = vmatpush1.msra.mxu0 %v99_v33 }
  0x41   :  { %204 = vmatmul.mubr.msk.f32.vlgmr.msra.gmra.mxu0 %vm110_vm0, %v107_v34 }
 0x101   :  { %v180_v36 = vpop.f32.mrf.mxu0 }
 0x102   :  { %v181_v38 = vadd.f32 %v180_v36, %v108_v35 }
 0x103   :  { %v182_v39 = vpop.f32.mrf.mxu0 }
 0x104   :  { %185 = vst [vmem:[#allocation11] sm:$0xff] %v181_v38  ;;  %v183_v40 = vadd.f32 %v182_v39, %v109_v37 }
 0x106   :  { %186 = vst [vmem:[#allocation11 + $0x8] sm:$0xff] %v183_v40 }
 0x107   :  { %304 = shalt.err (!%p301_p10)
}
 0x108   :  { %196 = dma.vmem_to_hbm [thread:$0]  %s194_s4, 256, %s382_s5, [#allocation5]  }
 0x109   :  { %319 = dma.done.wait [#allocation5], 256  }
 0x10a   :  { %320 = vsyncadd [#allocation5], 4294967040 }
 0x10b   :  { %200 = vsyncpa [#allocation4], 1 }
 0x10c   :  { %201 = vsyncpa [#allocation7], 1 }
 0x10d   :  { %202 = vsyncpa [#allocation10], 1 }
 0x10e   :  { %203 = vsyncpa [#allocation5], 1 }

</bundles_post_ra>
